<compile_context>
chip_gen: v5e
topology: v5e:2x2
jax: 0.10.0
libtpu: 0.0.40
codegen_flags: <defaults>
</compile_context>

<pallas_src>
import jax
import jax.numpy as jnp
from jax import lax
from jax.experimental import pallas as pl
from jax.experimental.pallas import tpu as pltpu


def make_primal_update_kernel(lambda_rof: float, tau: float, m_logical: int, n_logical: int):
    inv_denom = 1.0 / (1.0 + lambda_rof * tau)
    lt = lambda_rof * tau

    def kernel(x_ref, y_ref, img_ref, halo_ref, o_ref):
        i = pl.program_id(0)

        # Compute in f32 (no-op for f32 inputs; keeps v5e VPU happy for bf16 inputs).
        x = x_ref[...].astype(jnp.float32)      # (tm, Np)
        img = img_ref[...].astype(jnp.float32)  # (tm, Np)
        y0 = y_ref[0].astype(jnp.float32)       # (tm, Np) horizontal dual component
        y1 = y_ref[1].astype(jnp.float32)       # (tm, Np) vertical dual component
        halo = halo_ref[0].astype(jnp.float32)  # (1, Np)  previous tile's last y1 row (0 for tile 0)

        tm, np_ = x.shape
        col = lax.broadcasted_iota(jnp.int32, (tm, np_), 1)
        row_l = lax.broadcasted_iota(jnp.int32, (tm, np_), 0)
        row_g = row_l + i * tm                  # global row index

        # Horizontal backward divergence: zero the last LOGICAL column, then circular
        # shift-by-1 difference (wrapped element is zero -> boundary exact; padded
        # columns are zero so the wrap into column 0 is also zero).
        y0t = jnp.where(col == n_logical - 1, 0.0, y0)
        d_h = y0t - pltpu.roll(y0t, shift=1, axis=1)

        # Vertical backward divergence: zero the last LOGICAL row, roll within the tile,
        # then replace the wrapped first row with the halo row from the previous tile.
        y1t = jnp.where(row_g == m_logical - 1, 0.0, y1)
        rolled = pltpu.roll(y1t, shift=1, axis=0)
        prev = jnp.where(row_l == 0, jnp.broadcast_to(halo, (tm, np_)), rolled)
        d_v = y1t - prev

        out = (x + tau * (d_h + d_v) + lt * img) * inv_denom
        o_ref[...] = out.astype(o_ref.dtype)

    return kernel


def primal_update(x, y, img_obs, *, lambda_rof: float, tau: float, tile_rows=None):
    """x: [1,M,N], y: [2,M,N], img_obs: [1,M,N] -> [1,M,N]."""
    c, M, N = x.shape
    assert c == 1 and y.shape == (2, M, N) and img_obs.shape == (1, M, N)
    dtype = x.dtype
    bytes_el = jnp.dtype(dtype).itemsize

    # Lane-dense last dim; sublane-aligned rows (only to a multiple of 8, NOT of tm).
    Np = ((N + 127) // 128) * 128
    M8 = ((M + 7) // 8) * 8

    # ---- generation-aware tile / VMEM budget --------------------------------
    try:
        vmem_cap = getattr(pltpu.get_tpu_info(), "vmem_capacity_bytes", None)
    except Exception:
        vmem_cap = None
    if vmem_cap is None:
        vmem_cap = 64 * 1024 * 1024  # conservative (v7x-sized)

    if vmem_cap >= 96 * 1024 * 1024:       # v5e / v6e: 128 MiB physical VMEM
        budget, tm_cap, limit_cap = 48 * 1024 * 1024, 1024, 64 * 1024 * 1024
    else:                                  # v7x: 64 MiB per TensorCore
        budget, tm_cap, limit_cap = 20 * 1024 * 1024, 512, 32 * 1024 * 1024

    # VMEM model per row of tile: 5 streamed planes double-buffered (input dtype)
    # + ~4 f32 temporaries (rolls / masks / upcasts) the compiler may materialize.
    per_row_bytes = 10 * Np * bytes_el + 16 * Np

    if tile_rows is None:
        tm_max = max(8, min((budget // per_row_bytes) // 8 * 8, tm_cap, M8))
        want_split = True   # keep >= 2 row tiles so v7x's two TCs both get work
    else:
        tm_max = max(8, min((int(tile_rows) // 8) * 8, M8))
        want_split = False

    # Largest multiple-of-8 divisor of M8 that fits the budget: exact division means
    # no padding of M beyond 8-row alignment and no ragged last block.
    q = M8 // 8
    tm = 8
    for d in range(1, q + 1):
        if q % d:
            continue
        t = 8 * d
        if t > tm_max:
            continue
        if want_split and M8 > 8 and t == M8:
            continue
        tm = max(tm, t)
    num_tiles = M8 // tm

    # ---- pad (only what is strictly needed) ----------------------------------
    pad_m, pad_n = M8 - M, Np - N
    x2 = x.reshape(M, N)
    img2 = img_obs.reshape(M, N)
    if pad_m or pad_n:
        x2 = jnp.pad(x2, ((0, pad_m), (0, pad_n)))
        img2 = jnp.pad(img2, ((0, pad_m), (0, pad_n)))
        yp = jnp.pad(y, ((0, 0), (0, pad_m), (0, pad_n)))
    else:
        yp = y

    # Halo: for tile i > 0, the last y1 row of tile i-1 (global row i*tm - 1); zeros for tile 0.
    if num_tiles > 1:
        prev_last = yp[1, tm - 1 :: tm][: num_tiles - 1]          # (num_tiles-1, Np)
        halo = jnp.concatenate([jnp.zeros((1, Np), yp.dtype), prev_last], axis=0)
    else:
        halo = jnp.zeros((1, Np), yp.dtype)
    halo = halo[:, None, :]                                       # (num_tiles, 1, Np)

    kernel = make_primal_update_kernel(float(lambda_rof), float(tau), M, N)

    # Per-step VMEM footprint (double-buffered streams + f32 temporaries) + headroom.
    footprint = 10 * tm * Np * bytes_el + 4 * tm * Np * 4 + 4 * Np * bytes_el
    vmem_limit = int(min(limit_cap, footprint + 8 * 1024 * 1024))
    vmem_limit = int(max(vmem_limit, footprint + 2 * 1024 * 1024, 16 * 1024 * 1024))

    out_p = pl.pallas_call(
        kernel,
        out_shape=jax.ShapeDtypeStruct((M8, Np), dtype),
        grid=(num_tiles,),
        in_specs=[
            pl.BlockSpec((tm, Np), lambda i: (i, 0)),        # x
            pl.BlockSpec((2, tm, Np), lambda i: (0, i, 0)),  # y (both dual components, one stream)
            pl.BlockSpec((tm, Np), lambda i: (i, 0)),        # img_obs
            pl.BlockSpec((1, 1, Np), lambda i: (i, 0, 0)),   # halo row
        ],
        out_specs=pl.BlockSpec((tm, Np), lambda i: (i, 0)),
        compiler_params=pltpu.CompilerParams(
            dimension_semantics=("parallel",),
            vmem_limit_bytes=vmem_limit,
        ),
        cost_estimate=pl.CostEstimate(
            flops=8 * M * N,
            transcendentals=0,
            bytes_accessed=5 * M * N * bytes_el,  # 4 reads + 1 write of the logical image
        ),
    )(x2, yp, img2, halo)

    return out_p[:M, :N][None]

    # TODO(synk): the dominant remaining win is fusing the dual update (or running several
    # Chambolle-Pock inner iterations per pallas_call with input_output_aliases), keeping x
    # and y resident in VMEM instead of round-tripping HBM every iteration.


def primal_update_ref(x, y, img_obs, *, lambda_rof: float, tau: float):
    """Pure-JAX reference mirroring the PyTorch BackwardDivergence + primal update."""
    y0, y1 = y[0], y[1]
    M, N = y0.shape
    d_h = jnp.zeros((M, N), x.dtype)
    d_h = d_h.at[:, 0].set(y0[:, 0])
    d_h = d_h.at[:, 1:-1].set(y0[:, 1:-1] - y0[:, :-2])
    d_h = d_h.at[:, -1].set(-y0[:, -2])
    d_v = jnp.zeros((M, N), x.dtype)
    d_v = d_v.at[0, :].set(y1[0, :])
    d_v = d_v.at[1:-1, :].set(y1[1:-1, :] - y1[:-2, :])
    d_v = d_v.at[-1, :].set(-y1[-2, :])
    div = (d_h + d_v)[None]
    return (x + tau * div + lambda_rof * tau * img_obs) / (1.0 + lambda_rof * tau)


if __name__ == "__main__":
    lambda_rof = 7.0
    tau = 0.01
    key = jax.random.PRNGKey(0)

    cases = [
        dict(M=192, N=256, tile_rows=64),    # lane-dense, multi-tile path + halo
        dict(M=16, N=16, tile_rows=None),    # tiny, non-lane-dense -> N-padding, 2 auto tiles
        dict(M=100, N=200, tile_rows=None),  # misaligned M, N -> 8-row/128-lane padding, many tiles
    ]
    for c in cases:
        M, N = c["M"], c["N"]
        key, kx, ky, ki = jax.random.split(key, 4)
        x = jax.random.normal(kx, (1, M, N), dtype=jnp.float32)
        y = jax.random.normal(ky, (2, M, N), dtype=jnp.float32)
        img = jax.random.normal(ki, (1, M, N), dtype=jnp.float32)
        out = jax.block_until_ready(
            primal_update(x, y, img, lambda_rof=lambda_rof, tau=tau, tile_rows=c["tile_rows"])
        )
        ref = primal_update_ref(x, y, img, lambda_rof=lambda_rof, tau=tau)
        assert out.shape == (1, M, N)
        assert jnp.allclose(out, ref, atol=1e-5, rtol=1e-5), f"mismatch vs reference for {c}"

    print("KERNEL_OK")
</pallas_src>

<mosaic_0001>
module attributes {stable_mosaic.version = 11 : i64} {
  func.func @kernel(%arg0: i32, %arg1: memref<64x256xf32, #tpu.memory_space<vmem>>, %arg2: memref<2x64x256xf32, #tpu.memory_space<vmem>>, %arg3: memref<64x256xf32, #tpu.memory_space<vmem>>, %arg4: memref<1x1x256xf32, #tpu.memory_space<vmem>>, %arg5: memref<64x256xf32, #tpu.memory_space<vmem>>) attributes {dimension_semantics = [#tpu.dimension_semantics<parallel>], iteration_bounds = array<i64: 3>, scalar_prefetch = 0 : i64, scratch_operands = 0 : i64, tpu.core_type = #tpu.core_type<tc>, window_params = [{transform_indices = @transform_0, window_bounds = array<i64: 64, 256>}, {transform_indices = @transform_1, window_bounds = array<i64: 2, 64, 256>}, {transform_indices = @transform_2, window_bounds = array<i64: 64, 256>}, {transform_indices = @transform_3, window_bounds = array<i64: 1, 1, 256>}, {transform_indices = @transform_4, window_bounds = array<i64: 64, 256>}]} {
    %c0 = arith.constant 0 : index
    %c0_0 = arith.constant 0 : index
    %0 = vector.load %arg1[%c0, %c0_0] : memref<64x256xf32, #tpu.memory_space<vmem>>, vector<64x256xf32>
    %c0_1 = arith.constant 0 : index
    %c0_2 = arith.constant 0 : index
    %1 = vector.load %arg3[%c0_1, %c0_2] : memref<64x256xf32, #tpu.memory_space<vmem>>, vector<64x256xf32>
    %c0_3 = arith.constant 0 : index
    %c0_4 = arith.constant 0 : index
    %c0_5 = arith.constant 0 : index
    %2 = vector.load %arg2[%c0_3, %c0_4, %c0_5] : memref<2x64x256xf32, #tpu.memory_space<vmem>>, vector<1x64x256xf32>
    %3 = vector.shape_cast %2 : vector<1x64x256xf32> to vector<64x256xf32>
    %c1 = arith.constant 1 : index
    %c0_6 = arith.constant 0 : index
    %c0_7 = arith.constant 0 : index
    %4 = vector.load %arg2[%c1, %c0_6, %c0_7] : memref<2x64x256xf32, #tpu.memory_space<vmem>>, vector<1x64x256xf32>
    %5 = vector.shape_cast %4 : vector<1x64x256xf32> to vector<64x256xf32>
    %c0_8 = arith.constant 0 : index
    %c0_9 = arith.constant 0 : index
    %c0_10 = arith.constant 0 : index
    %6 = vector.load %arg4[%c0_8, %c0_9, %c0_10] : memref<1x1x256xf32, #tpu.memory_space<vmem>>, vector<1x1x256xf32>
    %7 = vector.shape_cast %6 : vector<1x1x256xf32> to vector<1x256xf32>
    %8 = tpu.iota {dimensions = array<i32: 1>} : vector<64x256xi32>
    %9 = tpu.iota {dimensions = array<i32: 0>} : vector<64x256xi32>
    %c64_i32 = arith.constant 64 : i32
    %10 = arith.muli %arg0, %c64_i32 : i32
    %11 = vector.broadcast %10 : i32 to vector<64x256xi32>
    %12 = arith.addi %9, %11 : vector<64x256xi32>
    %c255_i32 = arith.constant 255 : i32
    %13 = vector.broadcast %c255_i32 : i32 to vector<64x256xi32>
    %14 = arith.cmpi eq, %8, %13 : vector<64x256xi32>
    %cst = arith.constant 0.000000e+00 : f32
    %15 = vector.broadcast %cst : f32 to vector<64x256xf32>
    %16 = arith.select %14, %15, %3 : vector<64x256xi1>, vector<64x256xf32>
    %c1_i32 = arith.constant 1 : i32
    %17 = tpu.dynamic_rotate %16 by %c1_i32 dim 1 : vector<64x256xf32>, i32 -> vector<64x256xf32>
    %18 = arith.subf %16, %17 : vector<64x256xf32>
    %c191_i32 = arith.constant 191 : i32
    %19 = vector.broadcast %c191_i32 : i32 to vector<64x256xi32>
    %20 = arith.cmpi eq, %12, %19 : vector<64x256xi32>
    %cst_11 = arith.constant 0.000000e+00 : f32
    %21 = vector.broadcast %cst_11 : f32 to vector<64x256xf32>
    %22 = arith.select %20, %21, %5 : vector<64x256xi1>, vector<64x256xf32>
    %c1_i32_12 = arith.constant 1 : i32
    %23 = tpu.dynamic_rotate %22 by %c1_i32_12 dim 0 : vector<64x256xf32>, i32 -> vector<64x256xf32>
    %c0_i32 = arith.constant 0 : i32
    %24 = vector.broadcast %c0_i32 : i32 to vector<64x256xi32>
    %25 = arith.cmpi eq, %9, %24 : vector<64x256xi32>
    %26 = vector.shape_cast %7 : vector<1x256xf32> to vector<1x256xf32>
    %27 = vector.broadcast %26 : vector<1x256xf32> to vector<64x256xf32>
    %28 = arith.select %25, %27, %23 : vector<64x256xi1>, vector<64x256xf32>
    %29 = arith.subf %22, %28 : vector<64x256xf32>
    %30 = arith.addf %18, %29 : vector<64x256xf32>
    %cst_13 = arith.constant 0.00999999977 : f32
    %31 = vector.broadcast %cst_13 : f32 to vector<64x256xf32>
    %32 = arith.mulf %31, %30 : vector<64x256xf32>
    %33 = arith.addf %0, %32 : vector<64x256xf32>
    %cst_14 = arith.constant 7.000000e-02 : f32
    %34 = vector.broadcast %cst_14 : f32 to vector<64x256xf32>
    %35 = arith.mulf %34, %1 : vector<64x256xf32>
    %36 = arith.addf %33, %35 : vector<64x256xf32>
    %cst_15 = arith.constant 0.934579432 : f32
    %37 = vector.broadcast %cst_15 : f32 to vector<64x256xf32>
    %38 = arith.mulf %36, %37 : vector<64x256xf32>
    %c0_16 = arith.constant 0 : index
    %c0_17 = arith.constant 0 : index
    %39 = vector.load %arg5[%c0_16, %c0_17] : memref<64x256xf32, #tpu.memory_space<vmem>>, vector<64x256xf32>
    tpu.vector_store %arg5[%c0_16, %c0_17], %38 {strides = array<i32>} : memref<64x256xf32, #tpu.memory_space<vmem>>, vector<64x256xf32>,
    return
  }
  func.func @transform_0(%arg0: i32) -> (i32, i32) {
    %c0_i32 = arith.constant 0 : i32
    %c0_i32_0 = arith.constant 0 : i32
    return %arg0, %c0_i32 : i32, i32
  }
  func.func @transform_1(%arg0: i32) -> (i32, i32, i32) {
    %c0_i32 = arith.constant 0 : i32
    %c0_i32_0 = arith.constant 0 : i32
    %c0_i32_1 = arith.constant 0 : i32
    return %c0_i32, %arg0, %c0_i32_0 : i32, i32, i32
  }
  func.func @transform_2(%arg0: i32) -> (i32, i32) {
    %c0_i32 = arith.constant 0 : i32
    %c0_i32_0 = arith.constant 0 : i32
    return %arg0, %c0_i32 : i32, i32
  }
  func.func @transform_3(%arg0: i32) -> (i32, i32, i32) {
    %c0_i32 = arith.constant 0 : i32
    %c0_i32_0 = arith.constant 0 : i32
    %c0_i32_1 = arith.constant 0 : i32
    return %arg0, %c0_i32, %c0_i32_0 : i32, i32, i32
  }
  func.func @transform_4(%arg0: i32) -> (i32, i32) {
    %c0_i32 = arith.constant 0 : i32
    %c0_i32_0 = arith.constant 0 : i32
    return %arg0, %c0_i32 : i32, i32
  }
}

</mosaic_0001>

<bundles_post_ra>
// kernel: tpu_custom_call.1
= control target key start
LH: loop header
LB: loop body
LE: loop exit
PB: predicated region body
PF: predicated region fallthrough
CT: control target
= control target key end

     0   :  { %s1848_s0 = inlined_call_operand.hbm [shape: f32[192,256], index: 0, kind: input, shape index: {}]   ;;  %s1849_s1 = inlined_call_operand.hbm [shape: f32[2,192,256], index: 1, kind: input, shape index: {}]   ;;  %s1850_s2 = inlined_call_operand.hbm [shape: f32[192,256], index: 2, kind: input, shape index: {}]   ;;  %s1851_s3 = inlined_call_operand.hbm [shape: f32[3,1,256], index: 3, kind: input, shape index: {}]   ;;  %s1852_s4 = inlined_call_operand.hbm [shape: f32[192,256], index: 4, kind: output, shape index: {}]  }
   0x1   :  { %1862 = sst [smem:[#allocation19_spill]] %s1848_s0 }
   0x2   :  { %1863 = sst [smem:[#allocation20_spill]] %s1849_s1 }
   0x3   :  { %9 = vsyncpa [#allocation3], 0 }
   0x4   :  { %11 = vsyncpa [#allocation3 + $0x1], 0 }
   0x5   :  { %12 = vsyncpa [#allocation6], 0 }
   0x6   :  { %14 = vsyncpa [#allocation6 + $0x1], 0 }
   0x7   :  { %15 = vsyncpa [#allocation9], 0 }
   0x8   :  { %17 = vsyncpa [#allocation9 + $0x1], 0 }
   0x9   :  { %18 = vsyncpa [#allocation4], 0 }
   0xa   :  { %20 = vsyncpa [#allocation4 + $0x1], 0  ;;  %s1228_s15 = smov 0   ;;  %s1230_s16 = smov 0  }
   0xb   :  { %s1232_s17 = smov 0   ;;  %s1234_s18 = smov 0  }
   0xc LB: > { %s1249_s19 = sadd.s32 4294967295, %s1190_s18   ;;  %s911_s20 = sadd.s32 4294967294, %s1190_s18   ;;  %s1190_s18 = sphi %s1234_s18, %s1884_s18   ;;  %s1186_s17 = sphi %s1232_s17, %s1883_s17   ;;  %s1182_s16 = sphi %s1230_s16, %s1882_s16   ;;  %s1178_s15 = sphi %s1228_s15, %s1881_s15  }
   0xd   : > { %s1253_s21 = sadd.s32 1, %s1190_s18   ;;  %s33_s22 = sadd.s32 1, %s1186_s17 }
   0xe   : > { %s30_s23 = ssub.s32 %s1190_s18, %s1253_s21  ;;  %p40_p0 = scmp.ne.s32.totalorder %s1186_s17, %s1182_s16 }
   0xf   : > { %p31_p1 = scmp.eq.s32.totalorder %s30_s23, 0  ;;  %p41_p2 = scmp.eq.s32.totalorder %s1190_s18, 0 }
  0x10   : > { %p46_p3 = scmp.ne.s32.totalorder %s1182_s16, %s1178_s15  ;;  %p47_p4 = scmp.eq.s32.totalorder %s1249_s19, 0 }
  0x11   : > { %s1265_s24 = scalar_select %p31_p1, %s1186_s17, %s33_s22  }
  0x12   : > { %p1267_p5 = por %p41_p2, %p40_p0  ;;  %p1271_p6 = por %p47_p4, %p46_p3 }
  0x13   : > { %1864 = sst [smem:[#allocation18_spill]] %s1265_s24  ;;  %p148_p7 = scmp.eq.s32.totalorder %s1249_s19, 2 }
  0x14   : > { %p154_p8 = scmp.eq.s32.totalorder %s911_s20, 2  ;;  %p913_p11 = scmp.ge.s32.totalorder %s1190_s18, 3 }
  0x15   : > { %p1276_p9 = por %p148_p7, %p40_p0  ;;  %s1286_s29 = sand.u32 (!%p913_p11), 1, %s1186_s17  }
  0x16   : > { %p1280_p10 = por %p154_p8, %p46_p3  ;;  %170 = sbr.rel (%p913_p11) target bundleno = 88 (0x58), region = 16 }
  0x17   : > { %s1289_s30 = sshll.u32 (!%p913_p11), %s1190_s18, 7  ;;  %s1853_s5 = sshll.u32 (!%p913_p11), %s1286_s29, 7 }
  0x18   : > { %s1869_s0 = sld [smem:[#allocation19_spill]] (!%p913_p11)  ;;  %s178_s10 = scalar_lea.vmem (!%p913_p11), [#allocation2], %s1853_s5 }
  0x19   : > { %s187_s11 = sshll.u32 (!%p913_p11), %s178_s10, 4  ;;  %s175_s12 = scalar_lea.sflag (!%p913_p11), [#allocation3], %s1286_s29  ;;  %s188_s11 = int_to_ptr.vmem [resolvable:$true] %s187_s11 }
  0x1e   : > { %s184_s8 = scalar_lea.hbm %s1869_s0, %s1289_s30  ;;  %s1038_s23 = scalar_lea.hbm %s1869_s0, 384 }
  0x1f   : > { %s185_s9 = sshll.u32 %s184_s8, 4  ;;  %s186_s9 = int_to_ptr.hbm [resolvable:$true] %s185_s9 }
  0x20   : > { %s1032_s13 = sshra.s32 %s186_s9, 4  ;;  %s1033_s13 = int_to_ptr.hbm [resolvable:$true] %s1032_s13 }
  0x21   : > { %s1034_s14 = scalar_lea.hbm %s1033_s13, 128  ;;  %p1039_p1 = scmp.lt.s32.totalorder %s1033_s13, %s1869_s0 }
  0x22   : > { %p1035_p12 = scmp.ne.s32.totalorder %s1033_s13, %s1034_s14  ;;  %p1040_p2 = scmp.lt.s32.totalorder %s1038_s23, %s1034_s14 }
  0x24   : > { %p1036_p13 = pnand %p1035_p12, %p1267_p5  ;;  %p1041_p3 = por %p1040_p2, %p1039_p1 }
  0x26   : > { %p1037_p0 = pneg %p1036_p13 }
  0x28   : > { %p1042_p4 = pnand %p1041_p3, %p1037_p0 }
  0x2a   : > { %1045 = shalt.err (!%p1042_p4)
}
  0x2b   : > { %s1854_s8 = smov 256   ;;  %s1855_s10 = smov 16  }
  0x2c   : > { %967 = dma.hbm_to_vmem [thread:$0]  (%p1267_p5), %s186_s9, 2048, %s188_s11, %s175_s12, %s1854_s8, %s1854_s8, %s1855_s10  }
  0x2d   : > { %s197_s13 = sand.u32 1, %s1190_s18   ;;  %s918_s14 = sshll.u32 %s1286_s29, 8 }
  0x2e   : > { %s1870_s1 = sld [smem:[#allocation20_spill]]  ;;  %s201_s6 = scalar_lea.vmem [#allocation5], %s918_s14 }
  0x2f   : > { %s222_s7 = sshll.u32 %s201_s6, 4  ;;  %s1194_s12 = smov 6144   ;;  %s223_s7 = int_to_ptr.vmem [resolvable:$true] %s222_s7 }
  0x30   : > { %s968_s5 = scalar_select %p1267_p5, [#allocation0], [#allocation13] }
  0x31   : > { %969 = sst [smem:[#allocation12]] (%p1267_p5), %s1194_s12  ;;  %s1195_s8 = smov 2048  }
  0x32   : > { %s212_s11 = sld [smem:[%s968_s5]]   ;;  %s1196_s20 = smov 8  }
  0x33   : > { %970 = sst [smem:[#allocation12 + $0x1]] (%p1267_p5), %s1195_s8  ;;  %s1197_s14 = smov 256  }
  0x34   : > { %s207_s23 = scalar_lea.hbm %s1870_s1, %s1289_s30  ;;  %971 = sst [smem:[#allocation12 + $0x2]] (%p1267_p5), %s1196_s20 }
  0x35   : > { %s220_s9 = sshll.u32 %s207_s23, 4  ;;  %972 = sst [smem:[#allocation12 + $0x3]] (%p1267_p5), %s1197_s14  ;;  %s221_s9 = int_to_ptr.hbm [resolvable:$true] %s220_s9 }
  0x36   : > { %973 = sst [smem:[#allocation12 + $0x4]] (%p1267_p5), %s1197_s14  ;;  %s1198_s6 = smov 16  }
  0x37   : > { %974 = sst [smem:[#allocation12 + $0x5]] (%p1267_p5), %s1198_s6  ;;  %s198_s5 = scalar_lea.sflag [#allocation6], %s197_s13 }
  0x38   : > { %s922_s22 = sshll.u32 %s212_s11, 26  ;;  %s1199_s10 = smov [#allocation11]  }
  0x39   : > { %s923_s23 = sadd.s32 134217728, %s922_s22  ;;  %s255_s20 = scalar_lea.hbm %s1850_s2, %s1289_s30 }
  0x3a   : > { %975 = dma.general (%p1267_p5), %s221_s9, 4096, %s223_s7, %s198_s5, %s1199_s10, [#allocation12], %s923_s23, 0  }
  0x3b   : > { %s256_s0 = sshll.u32 %s255_s20, 4  ;;  %s1871_s1 = sshll.u32 %s1286_s29, 7  ;;  %s257_s0 = int_to_ptr.hbm [resolvable:$true] %s256_s0 }
  0x3c   : > { %s249_s11 = scalar_lea.vmem [#allocation7], %s1871_s1  ;;  %s1060_s14 = sshra.s32 %s257_s0, 4  ;;  %s1061_s14 = int_to_ptr.hbm [resolvable:$true] %s1060_s14 }
  0x3d   : > { %s258_s24 = sshll.u32 %s249_s11, 4  ;;  %s1062_s22 = scalar_lea.hbm %s1061_s14, 128  ;;  %s259_s24 = int_to_ptr.vmem [resolvable:$true] %s258_s24 }
  0x3e   : > { %p1063_p7 = scmp.ne.s32.totalorder %s1061_s14, %s1062_s22  ;;  %s1066_s7 = scalar_lea.hbm %s1850_s2, 384 }
  0x3f   : > { %p1067_p12 = scmp.lt.s32.totalorder %s1061_s14, %s1850_s2  ;;  %p1068_p13 = scmp.lt.s32.totalorder %s1066_s7, %s1062_s22 }
  0x40   : > { %p1064_p8 = pnand %p1063_p7, %p1267_p5 }
  0x41   : > { %p1069_p0 = por %p1068_p13, %p1067_p12 }
  0x42   : > { %p1065_p11 = pneg %p1064_p8 }
  0x44   : > { %p1070_p1 = pnand %p1069_p0, %p1065_p11 }
  0x46   : > { %1073 = shalt.err (!%p1070_p1)
}
  0x47   : > { %s1872_s1 = smov 16   ;;  %s1873_s30 = smov 256  }
  0x48   : > { %976 = dma.hbm_to_vmem [thread:$0]  (%p1267_p5), %s257_s0, 2048, %s259_s24, %s198_s5, %s1873_s30, %s1873_s30, %s1872_s1  }
  0x49   : > { %s928_s6 = sshll.u32 %s1286_s29, 1  ;;  %s929_s12 = sshll.u32 %s1190_s18, 1 }
  0x4a   : > { %s276_s11 = scalar_lea.hbm %s1851_s3, %s929_s12  ;;  %s272_s14 = scalar_lea.vmem [#allocation8], %s928_s6 }
  0x4b   : > { %s280_s22 = sshll.u32 %s272_s14, 4  ;;  %s278_s10 = sshll.u32 %s276_s11, 4  ;;  %s281_s22 = int_to_ptr.vmem [resolvable:$true] %s280_s22  ;;  %s279_s10 = int_to_ptr.hbm [resolvable:$true] %s278_s10 }
  0x4c   : > { %s269_s13 = scalar_lea.sflag [#allocation9], %s1286_s29  ;;  %s1088_s7 = sshra.s32 %s279_s10, 4  ;;  %s1089_s7 = int_to_ptr.hbm [resolvable:$true] %s1088_s7 }
  0x4d   : > { %s1090_s9 = scalar_lea.hbm %s1089_s7, 2  ;;  %s1094_s5 = scalar_lea.hbm %s1851_s3, 6 }
  0x4e   : > { %p1091_p2 = scmp.ne.s32.totalorder %s1089_s7, %s1090_s9  ;;  %p1095_p7 = scmp.lt.s32.totalorder %s1089_s7, %s1851_s3 }
  0x4f   : > { %p1096_p8 = scmp.lt.s32.totalorder %s1094_s5, %s1090_s9 }
  0x50   : > { %p1092_p3 = pnand %p1091_p2, %p1267_p5 }
  0x51   : > { %p1097_p11 = por %p1096_p8, %p1095_p7 }
  0x52   : > { %p1093_p4 = pneg %p1092_p3 }
  0x54   : > { %p1098_p12 = pnand %p1097_p11, %p1093_p4 }
  0x56   : > { %1101 = shalt.err (!%p1098_p12)
}
  0x57   : > { %977 = dma.hbm_to_vmem [thread:$0]  (%p1267_p5), %s279_s10, 32, %s281_s22, %s269_s13  }
  0x58 PF: > { %p930_p13 = scmp.ge.s32.totalorder %s1190_s18, 1  ;;  %p285_p0 = scmp.lt.s32.totalorder %s1190_s18, 4 }
  0x5a   : > { %p286_p1 = pnand %p930_p13, %p285_p0 }
  0x5b   : > { %s1372_s29 = sand.u32 (!%p286_p1), 1, %s1182_s16  }
  0x5c   : > { %289 = sbr.rel (%p286_p1) target bundleno = 279 (0x117), region = 36  ;;  %s1375_s30 = sshll.u32 (!%p286_p1), %s1372_s29, 7 }
  0x5d   : > { %s292_s6 = scalar_lea.sflag (!%p286_p1), [#allocation3], %s1372_s29  ;;  %s1379_s12 = scalar_lea.vmem (!%p286_p1), [#allocation2], %s1375_s30 }
  0x61   : > { %1161 = dma.done.wait (%p1271_p6), %s292_s6, 2048  }
  0x62   : > { %1163 = vsyncadd (%p1271_p6), %s292_s6, 4294965248  ;;  %s301_s25 = sand.u32 1, %s1249_s19   ;;  %s932_s8 = sshll.u32 %s1372_s29, 8 }
  0x63   : > { %s302_s20 = scalar_lea.sflag [#allocation6], %s301_s25  ;;  %s1387_s11 = scalar_lea.vmem [#allocation5], %s932_s8 }
  0x64   : > { %1165 = dma.done.wait (%p1271_p6), %s302_s20, 6144  }
  0x65   : > { %1167 = vsyncadd (%p1271_p6), %s302_s20, 4294961152  ;;  %s934_s14 = sshll.u32 %s1372_s29, 1  ;;  %s1395_s22 = scalar_lea.vmem [#allocation7], %s1375_s30 }
  0x66   : > { %s322_s10 = scalar_lea.sflag [#allocation9], %s1372_s29  ;;  %s1398_s13 = scalar_lea.vmem [#allocation8], %s934_s14 }
  0x67   : > { %1169 = dma.done.wait (%p1271_p6), %s322_s10, 32  }
  0x68   : > { %1171 = vsyncadd (%p1271_p6), %s322_s10, 4294967264  ;;  %v1405_v0 = vld [vmem:[%s1387_s11 + $0x20] sm:$0xff]  ;;  %v436_v3 = vlaneseq  ;;  %s1200_s7 = smov 1   ;;  %v1422_v5 = vld [vmem:[%s1387_s11 + $0x30] sm:$0xff]  ;;  %s952_s26 = sshll.u32 %s1249_s19, 6 }
  0x69   : > { %v1408_v1 = vld [vmem:[%s1387_s11] sm:$0xff]  ;;  %480 = vrot.lane.b32.xlu1 %v1405_v0, %s1200_s7  ;;  %v1425_v6 = vld [vmem:[%s1387_s11 + $0x10] sm:$0xff]  ;;  %v403_v9 = vld [vmem:[%s1387_s11 + $0x8] sm:$0xff]  ;;  %s1649_s9 = scalar_lea.vmem [#allocation10], %s1375_s30  ;;  %s966_s0 = sshll.u32 %s1249_s19, 7 }
  0x6a   : > { %v1411_v2 = vld [vmem:[%s1387_s11 + $0x40] sm:$0xff]  ;;  %476 = vrot.lane.b32.xlu0 %v1408_v1, %s1200_s7  ;;  %v1419_v4 = vand.u32 127, %v436_v3  ;;  %v1428_v7 = vld [vmem:[%s1387_s11 + $0x50] sm:$0xff]  ;;  %v407_v13 = vld [vmem:[%s1387_s11 + $0x28] sm:$0xff]  ;;  %v1495_v27 = vshrl.u32 %v436_v3, 7  ;;  %s768_s19 = scalar_lea.hbm %s1852_s4, %s966_s0  ;;  %s769_s23 = sshll.u32 %s1649_s9, 4  ;;  %s770_s23 = int_to_ptr.vmem [resolvable:$true] %s769_s23 }
  0x6b   : > { %484 = vrot.lane.b32.xlu2 %v1411_v2, %s1200_s7  ;;  %v1439_v10 = vld [vmem:[%s1387_s11 + $0x70] sm:$0xff]  ;;  %v1442_v11 = vld [vmem:[%s1387_s11 + $0x60] sm:$0xff]  ;;  %v405_v14 = vld [vmem:[%s1387_s11 + $0x18] sm:$0xff]  ;;  %s771_s1 = sshll.u32 %s768_s19, 4  ;;  %s756_s30 = scalar_lea.sflag [#allocation4], %s1372_s29  ;;  %s772_s1 = int_to_ptr.hbm [resolvable:$true] %s771_s1 }
  0x6c   : > { %v438_v8 = vadd.s32 128, %v1419_v4  ;;  %v409_v15 = vld [vmem:[%s1387_s11 + $0x38] sm:$0xff]  ;;  %v411_v20 = vld [vmem:[%s1387_s11 + $0x48] sm:$0xff]  ;;  %v447_v28 = vadd.s32 56, %v1495_v27  ;;  %v1499_v29 = vstv %s952_s26  ;;  %v936_v33 = vld [vmem:[%s1387_s11 + $0x80] sm:$0xff]  ;;  %v442_v42 = vadd.s32 16, %v1495_v27 }
  0x6d   : > { %v413_v19 = vld [vmem:[%s1387_s11 + $0x58] sm:$0xff]  ;;  %v415_v21 = vld [vmem:[%s1387_s11 + $0x68] sm:$0xff]  ;;  %v450_v31 = vadd.s32 %v1499_v29, %v1495_v27  ;;  %v950_v35 = vld [vmem:[%s1387_s11 + $0xf0] sm:$0xff]  ;;  %v443_v43 = vadd.s32 24, %v1495_v27  ;;  %vm581_vm3 = vcmp.lt.s32.totalorder %v1495_v27, 1  ;;  %v445_v53 = vadd.s32 40, %v1495_v27 }
  0x6e   : > { %vm459_vm0 = vcmp.eq.s32.totalorder %v438_v8, 255  ;;  %v417_v25 = vld [vmem:[%s1387_s11 + $0x78] sm:$0xff]  ;;  %v457_v32 = vadd.s32 %v1499_v29, %v447_v28  ;;  %v937_v34 = vld [vmem:[%s1387_s11 + $0x88] sm:$0xff]  ;;  %v435_v44 = vld [vmem:[%s1398_s13] sm:$0x3]  ;;  %v452_v49 = vadd.s32 %v1499_v29, %v442_v42  ;;  %vm598_vm4 = vcmp.eq.s32.totalorder %v1495_v27, 0 }
  0x6f   : > { %v1445_v12 = vsel %vm459_vm0, 0.0, %v403_v9  ;;  %v1457_v16 = vsel %vm459_vm0, 0.0, %v407_v13  ;;  %v1460_v17 = vsel %vm459_vm0, 0.0, %v405_v14  ;;  %v1463_v18 = vsel %vm459_vm0, 0.0, %v409_v15  ;;  %v951_v36 = vld [vmem:[%s1387_s11 + $0xf8] sm:$0xff]  ;;  %v940_v58 = vld [vmem:[%s1387_s11 + $0xa0] sm:$0xff] }
  0x70   : > { %v1475_v22 = vsel %vm459_vm0, 0.0, %v413_v19  ;;  %v1478_v23 = vsel %vm459_vm0, 0.0, %v411_v20  ;;  %v1481_v24 = vsel %vm459_vm0, 0.0, %v415_v21  ;;  %v1491_v26 = vsel %vm459_vm0, 0.0, %v417_v25  ;;  %v941_v59 = vld [vmem:[%s1387_s11 + $0xa8] sm:$0xff]  ;;  %v942_v60 = vld [vmem:[%s1387_s11 + $0xb0] sm:$0xff] }
  0x71   : > { %482 = vrot.lane.b32.xlu1 %v1422_v5, %s1200_s7  ;;  %vm541_vm1 = vcmp.eq.s32.totalorder %v450_v31, 191  ;;  %vm548_vm2 = vcmp.eq.s32.totalorder %v457_v32, 191  ;;  %v453_v50 = vadd.s32 %v1499_v29, %v443_v43  ;;  %v607_v51 = vperm.slane %v435_v44, 0  ;;  %v943_v61 = vld [vmem:[%s1387_s11 + $0xb8] sm:$0xff]  ;;  %v386_v25 = vld [vmem:[%s1395_s22] sm:$0xff]  ;;  %s1130_s6 = sshra.s32 %s772_s1, 4  ;;  %s1131_s6 = int_to_ptr.hbm [resolvable:$true] %s1130_s6 }
  0x72   : > { %478 = vrot.lane.b32.xlu0 %v1425_v6, %s1200_s7  ;;  %v1512_v38 = vsel %vm541_vm1, 0.0, %v936_v33  ;;  %v1514_v39 = vsel %vm541_vm1, 0.0, %v937_v34  ;;  %v1516_v40 = vsel %vm548_vm2, 0.0, %v950_v35  ;;  %v1518_v41 = vsel %vm548_vm2, 0.0, %v951_v36  ;;  %v946_v35 = vld [vmem:[%s1387_s11 + $0xd0] sm:$0xff]  ;;  %v947_v36 = vld [vmem:[%s1387_s11 + $0xd8] sm:$0xff]  ;;  %p1137_p3 = scmp.lt.s32.totalorder %s1131_s6, %s1852_s4 }
  0x73   : > { %486 = vrot.lane.b32.xlu2 %v1428_v7, %s1200_s7  ;;  %v565_v45 = vrot.slane %v1512_v38, 7  ;;  %v566_v46 = vrot.slane %v1514_v39, 7  ;;  %v1857_v47 = vrot.slane %v1516_v40, 7  ;;  %v1856_v48 = vrot.slane %v1518_v41, 7  ;;  %s1136_s20 = scalar_lea.hbm %s1852_s4, 384 }
  0x74   : > { %v608_v52 = vperm.slane %v435_v44, 1  ;;  %v446_v56 = vadd.s32 48, %v1495_v27  ;;  %vm543_vm5 = vcmp.eq.s32.totalorder %v452_v49, 191  ;;  %vm544_vm6 = vcmp.eq.s32.totalorder %v453_v50, 191  ;;  %v948_v49 = vld [vmem:[%s1387_s11 + $0xe0] sm:$0xff]  ;;  %v949_v50 = vld [vmem:[%s1387_s11 + $0xe8] sm:$0xff] }
  0x75   : > { %v596_v54 = vsel %vm581_vm3, %v1857_v47, %v565_v45  ;;  %v597_v55 = vsel %vm581_vm3, %v1856_v48, %v566_v46  ;;  %v455_v3 = vadd.s32 %v1499_v29, %v445_v53  ;;  %v1550_v8 = vsel %vm543_vm5, 0.0, %v940_v58 }
  0x76   : > { %v611_v62 = vsel %vm598_vm4, %v607_v51, %v596_v54  ;;  %v612_v63 = vsel %vm598_vm4, %v608_v52, %v597_v55  ;;  %v1552_v9 = vsel %vm543_vm5, 0.0, %v941_v59  ;;  %v1554_v13 = vsel %vm544_vm6, 0.0, %v942_v60  ;;  %v387_v51 = vld [vmem:[%s1395_s22 + $0x8] sm:$0xff] }
  0x77   : > { %v456_v14 = vadd.s32 %v1499_v29, %v446_v56  ;;  %vm508_vm7 = vcmp.lt.s32.totalorder %v1419_v4, 1  ;;  %v1558_v15 = vsel %vm544_vm6, 0.0, %v943_v61  ;;  %v441_v19 = vadd.s32 8, %v1495_v27 }
  0x78   : > { %v627_v20 = vsub.f32 %v1512_v38, %v611_v62  ;;  %v628_v21 = vsub.f32 %v1514_v39, %v612_v63  ;;  %v569_v32 = vrot.slane %v1550_v8, 7  ;;  %v570_v33 = vrot.slane %v1552_v9, 7  ;;  %v370_v63 = vld [vmem:[%s1379_s12] sm:$0xff] }
  0x79   : > { %490 = vrot.lane.b32.xlu1 %v1439_v10, %s1200_s7  ;;  %v1859_v34 = vrot.slane %v1554_v13, 7  ;;  %vm546_vm8 = vcmp.eq.s32.totalorder %v455_v3, 191  ;;  %v1858_v44 = vrot.slane %v1558_v15, 7  ;;  %vm547_vm9 = vcmp.eq.s32.totalorder %v456_v14, 191  ;;  %v371_v3 = vld [vmem:[%s1379_s12 + $0x8] sm:$0xff] }
  0x7a   : > { %488 = vrot.lane.b32.xlu0 %v1442_v11, %s1200_s7  ;;  %v451_v54 = vadd.s32 %v1499_v29, %v441_v19  ;;  %v691_v55 = vmul.f32 0.07, %v386_v25  ;;  %v1582_v56 = vsel %vm546_vm8, 0.0, %v946_v35  ;;  %v1584_v58 = vsel %vm546_vm8, 0.0, %v947_v36  ;;  %v938_v25 = vld [vmem:[%s1387_s11 + $0x90] sm:$0xff] }
  0x7b   : > { %492 = vrot.lane.b32.xlu2 %v1445_v12, %s1200_s7  ;;  %v1586_v61 = vsel %vm547_vm9, 0.0, %v948_v49  ;;  %v1588_v62 = vsel %vm547_vm9, 0.0, %v949_v50  ;;  %v591_v14 = vsel %vm581_vm3, %v570_v33, %v1858_v44  ;;  %v444_v19 = vadd.s32 32, %v1495_v27  ;;  %v376_v44 = vld [vmem:[%s1379_s12 + $0x30] sm:$0xff] }
  0x7c   : > { %vm542_vm10 = vcmp.eq.s32.totalorder %v451_v54, 191  ;;  %v576_v35 = vrot.slane %v1584_v58, 7  ;;  %v1861_v36 = vrot.slane %v1586_v61, 7 }
  0x81   : > { %496 = vrot.lane.b32.xlu1 %v1457_v16, %s1200_s7 }
  0x82   : > { %494 = vrot.lane.b32.xlu0 %v1460_v17, %s1200_s7 }
  0x83   : > { %498 = vrot.lane.b32.xlu2 %v1463_v18, %s1200_s7 }
  0x89   : > { %502 = vrot.lane.b32.xlu1 %v1475_v22, %s1200_s7 }
  0x8a   : > { %500 = vrot.lane.b32.xlu0 %v1478_v23, %s1200_s7 }
  0x8b   : > { %504 = vrot.lane.b32.xlu2 %v1481_v24, %s1200_s7 }
  0x92   : > { %506 = vrot.lane.b32.xlu0 %v1491_v26, %s1200_s7 }
  0xc5   : > { %v1501_v30 = vpop.permute.xlu2 %484 }
  0xcd   : > { %v1510_v37 = vpop.permute.xlu2 %486 }
  0xd5   : > { %v493_v57 = vpop.permute.xlu2 %492 }
  0xdb   : > { %v1564_v28 = vpop.permute.xlu1 %480 }
  0xdc   : > { %v477_v31 = vpop.permute.xlu0 %476 }
  0xdd   : > { %v509_v42 = vsel %vm508_vm7, %v477_v31, %v493_v57  ;;  %v517_v43 = vsel %vm508_vm7, %v493_v57, %v477_v31  ;;  %v499_v60 = vpop.permute.xlu2 %498  ;;  %v575_v31 = vrot.slane %v1582_v56, 7 }
  0xde   : > { %v525_v52 = vsub.f32 %v1408_v1, %v517_v43  ;;  %v526_v53 = vsub.f32 %v1445_v12, %v509_v42  ;;  %v692_v1 = vmul.f32 0.07, %v387_v51  ;;  %v590_v12 = vsel %vm581_vm3, %v569_v32, %v1859_v34  ;;  %v393_v34 = vld [vmem:[%s1395_s22 + $0x38] sm:$0xff] }
  0xdf   : > { %v1860_v42 = vrot.slane %v1588_v62, 7  ;;  %v633_v51 = vsub.f32 %v1554_v13, %v590_v12 }
  0xe0   : > { %v643_v57 = vadd.f32 %v627_v20, %v525_v52  ;;  %v644_v59 = vadd.f32 %v628_v21, %v526_v53  ;;  %v634_v52 = vsub.f32 %v1558_v15, %v591_v14 }
  0xe2   : > { %v659_v20 = vmul.f32 0.01, %v643_v57  ;;  %v660_v21 = vmul.f32 0.01, %v644_v59  ;;  %v939_v57 = vld [vmem:[%s1387_s11 + $0x98] sm:$0xff] }
  0xe3   : > { %v483_v50 = vpop.permute.xlu1 %482 }
  0xe4   : > { %v675_v43 = vadd.f32 %v659_v20, %v370_v63  ;;  %v676_v49 = vadd.f32 %v660_v21, %v371_v3  ;;  %v1612_v53 = vpop.permute.xlu0 %478  ;;  %v512_v59 = vsel %vm508_vm7, %v483_v50, %v499_v60  ;;  %v520_v48 = vsel %vm508_vm7, %v499_v60, %v483_v50  ;;  %v392_v21 = vld [vmem:[%s1395_s22 + $0x30] sm:$0xff]  ;;  %v377_v60 = vld [vmem:[%s1379_s12 + $0x38] sm:$0xff]  ;;  %v944_v50 = vld [vmem:[%s1387_s11 + $0xc0] sm:$0xff] }
  0xe5   : > { %v1620_v63 = vsel %vm542_vm10, 0.0, %v938_v25  ;;  %v454_v3 = vadd.s32 %v1499_v29, %v444_v19  ;;  %v531_v14 = vsub.f32 %v1422_v5, %v520_v48  ;;  %v532_v47 = vsub.f32 %v1463_v18, %v512_v59  ;;  %v398_v25 = vld [vmem:[%s1395_s22 + $0x60] sm:$0xff]  ;;  %v945_v59 = vld [vmem:[%s1387_s11 + $0xc8] sm:$0xff] }
  0xe6   : > { %v707_v20 = vadd.f32 %v691_v55, %v675_v43  ;;  %v708_v12 = vadd.f32 %v692_v1, %v676_v49  ;;  %v584_v29 = vsel %vm581_vm3, %v575_v31, %v1861_v36  ;;  %v585_v5 = vsel %vm581_vm3, %v576_v35, %v1860_v42 }
  0xe7   : > { %v1641_v48 = vsel %vm542_vm10, 0.0, %v939_v57  ;;  %v649_v1 = vadd.f32 %v633_v51, %v531_v14  ;;  %v650_v19 = vadd.f32 %v634_v52, %v532_v47  ;;  %v697_v43 = vmul.f32 0.07, %v392_v21 }
  0xe8   : > { %v723_v18 = vmul.f32 0.93457943, %v707_v20  ;;  %v724_v55 = vmul.f32 0.93457943, %v708_v12  ;;  %v567_v49 = vrot.slane %v1620_v63, 7  ;;  %vm545_vm11 = vcmp.eq.s32.totalorder %v454_v3, 191  ;;  %v505_v20 = vpop.permute.xlu2 %504 }
  0xe9   : > { %v665_v54 = vmul.f32 0.01, %v649_v1  ;;  %v666_v57 = vmul.f32 0.01, %v650_v19  ;;  %v698_v42 = vmul.f32 0.07, %v393_v34  ;;  %v639_v51 = vsub.f32 %v1586_v61, %v584_v29 }
  0xea   : > { %739 = vst [vmem:[%s1649_s9] sm:$0xff] %v723_v18  ;;  %v640_v47 = vsub.f32 %v1588_v62, %v585_v5  ;;  %v703_v52 = vmul.f32 0.07, %v398_v25  ;;  %v568_v12 = vrot.slane %v1641_v48, 7  ;;  %v1659_v34 = vsel %vm545_vm11, 0.0, %v944_v50  ;;  %v399_v19 = vld [vmem:[%s1395_s22 + $0x68] sm:$0xff] }
  0xeb   : > { %740 = vst [vmem:[%s1649_s9 + $0x8] sm:$0xff] %v724_v55  ;;  %v681_v21 = vadd.f32 %v665_v54, %v376_v44  ;;  %v682_v14 = vadd.f32 %v666_v57, %v377_v60  ;;  %v1656_v36 = vpop.permute.xlu1 %490  ;;  %v1662_v29 = vsel %vm545_vm11, 0.0, %v945_v59  ;;  %v592_v44 = vsel %vm581_vm3, %v567_v49, %v569_v32  ;;  %v390_v59 = vld [vmem:[%s1395_s22 + $0x20] sm:$0xff]  ;;  %v391_v54 = vld [vmem:[%s1395_s22 + $0x28] sm:$0xff] }
  0xec   : > { %v489_v18 = vpop.permute.xlu0 %488  ;;  %v594_v60 = vsel %vm581_vm3, %v565_v45, %v567_v49  ;;  %v382_v57 = vld [vmem:[%s1379_s12 + $0x60] sm:$0xff]  ;;  %v593_v38 = vsel %vm581_vm3, %v568_v12, %v570_v33  ;;  %v595_v45 = vsel %vm581_vm3, %v566_v46, %v568_v12  ;;  %v573_v32 = vrot.slane %v1659_v34, 7 }
  0xed   : > { %v515_v5 = vsel %vm508_vm7, %v489_v18, %v505_v20  ;;  %v523_v55 = vsel %vm508_vm7, %v505_v20, %v489_v18  ;;  %v713_v1 = vadd.f32 %v697_v43, %v681_v21  ;;  %v714_v3 = vadd.f32 %v698_v42, %v682_v14  ;;  %v383_v20 = vld [vmem:[%s1379_s12 + $0x68] sm:$0xff]  ;;  %v388_v21 = vld [vmem:[%s1395_s22 + $0x10] sm:$0xff]  ;;  %v389_v14 = vld [vmem:[%s1395_s22 + $0x18] sm:$0xff] }
  0xee   : > { %v537_v25 = vsub.f32 %v1442_v11, %v523_v55  ;;  %v538_v50 = vsub.f32 %v1481_v24, %v515_v5  ;;  %v574_v11 = vrot.slane %v1662_v29, 7  ;;  %v704_v18 = vmul.f32 0.07, %v399_v19 }
  0xef   : > { %v729_v24 = vmul.f32 0.93457943, %v713_v1  ;;  %v730_v42 = vmul.f32 0.93457943, %v714_v3  ;;  %v1695_v5 = vmul.f32 0.07, %v390_v59  ;;  %v631_v46 = vsub.f32 %v1550_v8, %v592_v44 }
  0xf0   : > { %v655_v43 = vadd.f32 %v639_v51, %v537_v25  ;;  %v656_v49 = vadd.f32 %v640_v47, %v538_v50  ;;  %v1697_v33 = vmul.f32 0.07, %v391_v54  ;;  %v629_v12 = vsub.f32 %v1620_v63, %v594_v60 }
  0xf1   : > { %745 = vst [vmem:[%s1649_s9 + $0x30] sm:$0xff] %v729_v24  ;;  %v632_v1 = vsub.f32 %v1552_v9, %v593_v38  ;;  %v630_v51 = vsub.f32 %v1641_v48, %v595_v45  ;;  %v693_v47 = vmul.f32 0.07, %v388_v21  ;;  %v694_v3 = vmul.f32 0.07, %v389_v14  ;;  %v397_v38 = vld [vmem:[%s1395_s22 + $0x58] sm:$0xff] }
  0xf2   : > { %v671_v39 = vmul.f32 0.01, %v655_v43  ;;  %v672_v55 = vmul.f32 0.01, %v656_v49  ;;  %746 = vst [vmem:[%s1649_s9 + $0x38] sm:$0xff] %v730_v42  ;;  %v586_v8 = vsel %vm581_vm3, %v573_v32, %v575_v31  ;;  %v587_v9 = vsel %vm581_vm3, %v574_v11, %v576_v35  ;;  %v374_v43 = vld [vmem:[%s1379_s12 + $0x20] sm:$0xff] }
  0xf3   : > { %v497_v50 = vpop.permute.xlu1 %496  ;;  %v1874_v24 = vrot.slane %v1554_v13, 7  ;;  %v372_v14 = vld [vmem:[%s1379_s12 + $0x10] sm:$0xff] }
  0xf4   : > { %v687_v19 = vadd.f32 %v671_v39, %v382_v57  ;;  %v688_v25 = vadd.f32 %v672_v55, %v383_v20  ;;  %v495_v59 = vpop.permute.xlu0 %494  ;;  %v511_v63 = vsel %vm508_vm7, %v1564_v28, %v497_v50  ;;  %v519_v48 = vsel %vm508_vm7, %v497_v50, %v1564_v28  ;;  %v396_v20 = vld [vmem:[%s1395_s22 + $0x50] sm:$0xff]  ;;  %v373_v55 = vld [vmem:[%s1379_s12 + $0x18] sm:$0xff] }
  0xf5   : > { %v510_v44 = vsel %vm508_vm7, %v1612_v53, %v495_v59  ;;  %v518_v31 = vsel %vm508_vm7, %v495_v59, %v1612_v53  ;;  %v529_v54 = vsub.f32 %v1405_v0, %v519_v48  ;;  %v530_v57 = vsub.f32 %v1457_v16, %v511_v63 }
  0xf6   : > { %v719_v60 = vadd.f32 %v703_v52, %v687_v19  ;;  %v720_v35 = vadd.f32 %v704_v18, %v688_v25  ;;  %v527_v28 = vsub.f32 %v1425_v6, %v518_v31  ;;  %v528_v45 = vsub.f32 %v1460_v17, %v510_v44  ;;  %v375_v6 = vld [vmem:[%s1379_s12 + $0x28] sm:$0xff] }
  0xf7   : > { %v588_v53 = vsel %vm581_vm3, %v1874_v24, %v573_v32  ;;  %v1875_v52 = vrot.slane %v1558_v15, 7  ;;  %v647_v49 = vadd.f32 %v631_v46, %v529_v54  ;;  %v648_v21 = vadd.f32 %v632_v1, %v530_v57  ;;  %v381_v24 = vld [vmem:[%s1379_s12 + $0x58] sm:$0xff] }
  0xf8   : > { %v735_v42 = vmul.f32 0.93457943, %v719_v60  ;;  %v736_v16 = vmul.f32 0.93457943, %v720_v35  ;;  %v645_v17 = vadd.f32 %v629_v12, %v527_v28  ;;  %v646_v18 = vadd.f32 %v630_v51, %v528_v45  ;;  %v394_v45 = vld [vmem:[%s1395_s22 + $0x40] sm:$0xff] }
  0xf9   : > { %v589_v0 = vsel %vm581_vm3, %v1875_v52, %v574_v11  ;;  %v1742_v13 = vmul.f32 0.07, %v396_v20  ;;  %v1744_v39 = vmul.f32 0.07, %v397_v38  ;;  %v663_v15 = vmul.f32 0.01, %v647_v49 }
  0xfa   : > { %751 = vst [vmem:[%s1649_s9 + $0x60] sm:$0xff] %v735_v42  ;;  %v664_v32 = vmul.f32 0.01, %v648_v21  ;;  %v637_v11 = vsub.f32 %v1582_v56, %v586_v8  ;;  %v638_v19 = vsub.f32 %v1584_v58, %v587_v9  ;;  %v661_v25 = vmul.f32 0.01, %v645_v17  ;;  %v379_v17 = vld [vmem:[%s1379_s12 + $0x48] sm:$0xff] }
  0xfb   : > { %752 = vst [vmem:[%s1649_s9 + $0x68] sm:$0xff] %v736_v16  ;;  %v662_v46 = vmul.f32 0.01, %v646_v18  ;;  %v635_v1 = vsub.f32 %v1659_v34, %v588_v53  ;;  %v636_v12 = vsub.f32 %v1662_v29, %v589_v0  ;;  %v679_v51 = vadd.f32 %v663_v15, %v374_v43  ;;  %v503_v59 = vpop.permute.xlu1 %502 }
  0xfc   : > { %v680_v50 = vadd.f32 %v664_v32, %v375_v6  ;;  %v501_v63 = vpop.permute.xlu0 %500  ;;  %v1876_v48 = vrot.slane %v1516_v40, 7  ;;  %v1877_v44 = vrot.slane %v1586_v61, 7  ;;  %v1878_v58 = vrot.slane %v1518_v41, 7 }
  0xfd   : > { %v1879_v8 = vrot.slane %v1588_v62, 7  ;;  %v677_v9 = vadd.f32 %v661_v25, %v372_v14  ;;  %v678_v29 = vadd.f32 %v662_v46, %v373_v55  ;;  %v514_v31 = vsel %vm508_vm7, %v1510_v37, %v503_v59  ;;  %v378_v14 = vld [vmem:[%s1379_s12 + $0x40] sm:$0xff]  ;;  %v400_v25 = vld [vmem:[%s1395_s22 + $0x70] sm:$0xff] }
  0xfe   : > { %v582_v56 = vsel %vm581_vm3, %v1877_v44, %v1876_v48  ;;  %v522_v61 = vsel %vm508_vm7, %v503_v59, %v1510_v37  ;;  %v711_v60 = vadd.f32 %v1695_v5, %v679_v51  ;;  %v712_v62 = vadd.f32 %v1697_v33, %v680_v50  ;;  %v385_v48 = vld [vmem:[%s1379_s12 + $0x78] sm:$0xff] }
  0xff   : > { %v583_v34 = vsel %vm581_vm3, %v1879_v8, %v1878_v58  ;;  %v535_v27 = vsub.f32 %v1428_v7, %v522_v61  ;;  %v536_v35 = vsub.f32 %v1475_v22, %v514_v31  ;;  %v709_v54 = vadd.f32 %v693_v47, %v677_v9  ;;  %v395_v7 = vld [vmem:[%s1395_s22 + $0x48] sm:$0xff] }
 0x100   : > { %v710_v57 = vadd.f32 %v694_v3, %v678_v29  ;;  %v513_v20 = vsel %vm508_vm7, %v1501_v30, %v501_v63  ;;  %v521_v37 = vsel %vm508_vm7, %v501_v63, %v1501_v30  ;;  %v727_v5 = vmul.f32 0.93457943, %v711_v60  ;;  %v380_v3 = vld [vmem:[%s1379_s12 + $0x50] sm:$0xff] }
 0x101   : > { %v728_v38 = vmul.f32 0.93457943, %v712_v62  ;;  %v653_v33 = vadd.f32 %v637_v11, %v535_v27  ;;  %v654_v28 = vadd.f32 %v638_v19, %v536_v35  ;;  %v725_v22 = vmul.f32 0.93457943, %v709_v54 }
 0x102   : > { %v726_v47 = vmul.f32 0.93457943, %v710_v57  ;;  %v533_v53 = vsub.f32 %v1411_v2, %v521_v37  ;;  %v534_v52 = vsub.f32 %v1478_v23, %v513_v20  ;;  %743 = vst [vmem:[%s1649_s9 + $0x20] sm:$0xff] %v727_v5  ;;  %v699_v43 = vmul.f32 0.07, %v394_v45 }
 0x103   : > { %v669_v30 = vmul.f32 0.01, %v653_v33  ;;  %v670_v0 = vmul.f32 0.01, %v654_v28  ;;  %744 = vst [vmem:[%s1649_s9 + $0x28] sm:$0xff] %v728_v38  ;;  %v641_v2 = vsub.f32 %v1516_v40, %v582_v56  ;;  %v642_v23 = vsub.f32 %v1518_v41, %v583_v34  ;;  %v401_v41 = vld [vmem:[%s1395_s22 + $0x78] sm:$0xff] }
 0x104   : > { %v651_v42 = vadd.f32 %v635_v1, %v533_v53  ;;  %v652_v16 = vadd.f32 %v636_v12, %v534_v52  ;;  %v700_v49 = vmul.f32 0.07, %v395_v7  ;;  %741 = vst [vmem:[%s1649_s9 + $0x10] sm:$0xff] %v725_v22  ;;  %v507_v18 = vpop.permute.xlu0 %506  ;;  %v705_v44 = vmul.f32 0.07, %v400_v25 }
 0x105   : > { %v685_v21 = vadd.f32 %v669_v30, %v380_v3  ;;  %v686_v6 = vadd.f32 %v670_v0, %v381_v24  ;;  %742 = vst [vmem:[%s1649_s9 + $0x18] sm:$0xff] %v726_v47  ;;  %v516_v55 = vsel %vm508_vm7, %v1656_v36, %v507_v18  ;;  %v524_v11 = vsel %vm508_vm7, %v507_v18, %v1656_v36 }
 0x106   : > { %v667_v15 = vmul.f32 0.01, %v651_v42  ;;  %v668_v32 = vmul.f32 0.01, %v652_v16  ;;  %v539_v46 = vsub.f32 %v1439_v10, %v524_v11  ;;  %v540_v1 = vsub.f32 %v1491_v26, %v516_v55 }
 0x107   : > { %v717_v19 = vadd.f32 %v1742_v13, %v685_v21  ;;  %v718_v40 = vadd.f32 %v1744_v39, %v686_v6  ;;  %v384_v39 = vld [vmem:[%s1379_s12 + $0x70] sm:$0xff]  ;;  %v706_v56 = vmul.f32 0.07, %v401_v41  ;;  %s1132_s12 = scalar_lea.hbm %s1131_s6, 128 }
 0x108   : > { %v683_v12 = vadd.f32 %v667_v15, %v378_v14  ;;  %v684_v51 = vadd.f32 %v668_v32, %v379_v17  ;;  %v657_v36 = vadd.f32 %v641_v2, %v539_v46  ;;  %v658_v59 = vadd.f32 %v642_v23, %v540_v1  ;;  %p1133_p5 = scmp.ne.s32.totalorder %s1131_s6, %s1132_s12  ;;  %p1138_p4 = scmp.lt.s32.totalorder %s1136_s20, %s1132_s12 }
 0x109   : > { %v733_v50 = vmul.f32 0.93457943, %v717_v19  ;;  %v734_v4 = vmul.f32 0.93457943, %v718_v40 }
 0x10a   : > { %v715_v13 = vadd.f32 %v699_v43, %v683_v12  ;;  %v716_v63 = vadd.f32 %v700_v49, %v684_v51  ;;  %v673_v10 = vmul.f32 0.01, %v657_v36  ;;  %v674_v26 = vmul.f32 0.01, %v658_v59  ;;  %p1134_p6 = pnand %p1133_p5, %p1276_p9  ;;  %p1139_p7 = por %p1138_p4, %p1137_p3 }
 0x10b   : > { %749 = vst [vmem:[%s1649_s9 + $0x50] sm:$0xff] %v733_v50 }
 0x10c   : > { %750 = vst [vmem:[%s1649_s9 + $0x58] sm:$0xff] %v734_v4  ;;  %v731_v58 = vmul.f32 0.93457943, %v715_v13  ;;  %v732_v8 = vmul.f32 0.93457943, %v716_v63  ;;  %v689_v34 = vadd.f32 %v673_v10, %v384_v39  ;;  %v690_v9 = vadd.f32 %v674_v26, %v385_v48  ;;  %p1135_p2 = pneg %p1134_p6 }
 0x10e   : > { %747 = vst [vmem:[%s1649_s9 + $0x40] sm:$0xff] %v731_v58  ;;  %v721_v29 = vadd.f32 %v705_v44, %v689_v34  ;;  %v722_v31 = vadd.f32 %v706_v56, %v690_v9  ;;  %p1140_p8 = pnand %p1139_p7, %p1135_p2 }
 0x10f   : > { %748 = vst [vmem:[%s1649_s9 + $0x48] sm:$0xff] %v732_v8 }
 0x110   : > { %v737_v61 = vmul.f32 0.93457943, %v721_v29  ;;  %v738_v60 = vmul.f32 0.93457943, %v722_v31 }
 0x112   : > { %753 = vst [vmem:[%s1649_s9 + $0x70] sm:$0xff] %v737_v61 }
 0x113   : > { %754 = vst [vmem:[%s1649_s9 + $0x78] sm:$0xff] %v738_v60 }
 0x114   : > { %1143 = shalt.err (!%p1140_p8)
}
 0x115   : > { %s1201_s29 = smov 256   ;;  %s1202_s22 = smov 16  }
 0x116   : > { %982 = dma.vmem_to_hbm [thread:$0]  (%p1276_p9), %s770_s23, 2048, %s772_s1, %s756_s30, %s1201_s29, %s1201_s29, %s1202_s22  }
 0x117 PF: > { %p988_p11 = scmp.ge.s32.totalorder %s1190_s18, 2  ;;  %s786_s10 = sand.u32 1, %s1178_s15  }
 0x118   : > { %s787_s13 = scalar_lea.sflag [#allocation4], %s786_s10 }
 0x119   : > { %p985_p12 = pnand %p988_p11, %p1280_p10 }
 0x11b   : > { %p986_p13 = pneg %p985_p12 }
 0x11d   : > { %1173 = dma.done.wait (%p986_p13), %s787_s13, 2048  }
 0x11e   : > { %1175 = vsyncadd (%p986_p13), %s787_s13, 4294965248  ;;  %s1880_s7 = sld [smem:[#allocation18_spill]]  ;;  %p23_p0 = scmp.ge.s32.totalorder %s1253_s21, 5  }
 0x11f   : > { %s1881_s15 = smov %s1182_s16  ;;  %s1882_s16 = smov %s1186_s17 }
 0x120   : > { %s1884_s18 = smov %s1253_s21  ;;  %25 = sbr.rel (!%p23_p0) target bundleno = 12 (0xc), region = 124 }
 0x124   : > { %s1883_s17 = smov %s1880_s7 }
 0x125   :  { %793 = vsyncpa [#allocation3], 1 }
 0x126   :  { %795 = vsyncpa [#allocation3 + $0x1], 1 }
 0x127   :  { %796 = vsyncpa [#allocation6], 1 }
 0x128   :  { %798 = vsyncpa [#allocation6 + $0x1], 1 }
 0x129   :  { %799 = vsyncpa [#allocation9], 1 }
 0x12a   :  { %801 = vsyncpa [#allocation9 + $0x1], 1 }
 0x12b   :  { %802 = vsyncpa [#allocation4], 1 }
 0x12c   :  { %804 = vsyncpa [#allocation4 + $0x1], 1 }

</bundles_post_ra>
